<compile_context>
chip_gen: v5e
topology: v5e:2x2
jax: 0.10.0
libtpu: 0.0.40
codegen_flags: <defaults>
</compile_context>

<pallas_src>
import jax
import jax.numpy as jnp
from jax import lax
from jax.experimental import pallas as pl
from jax.experimental.pallas import tpu as pltpu


def res_stem_in(x_nchw, w_oihw, gamma, beta, running_mean, running_var,
                eps=1e-5, compute_dtype=None):
    """ResStemIN forward.

    x_nchw: (N, Cin, H, W)  ->  (N, Cout, H//4, W//4)

    compute_dtype: optionally cast patches/weights (e.g. jnp.bfloat16) to halve
    the dominant HBM traffic; accumulation stays float32 either way.
    """
    N, Cin, H, W = x_nchw.shape
    Cout = w_oihw.shape[0]
    assert H % 4 == 0 and W % 4 == 0, "kernel assumes H, W divisible by 4"
    Hc, Wc = H // 4, W // 4          # pooled output spatial dims
    K = 49 * Cin                     # fused contraction depth (7*7*Cin)
    M = Hc * Wc                      # flattened pooled spatial (lane dim)

    # -------- glue: BN (inference) parameter folding --------
    inv_std = 1.0 / jnp.sqrt(running_var.astype(jnp.float32) + eps)
    scale = gamma.astype(jnp.float32) * inv_std                       # (Cout,)
    bias = (beta.astype(jnp.float32)
            - running_mean.astype(jnp.float32) * scale).reshape(Cout, 1)

    # conv weight (Cout, Cin, 7, 7) -> (Cout, K) with K ordered (kh, kw, cin),
    # with the BN scale folded per output channel.
    w2d = jnp.transpose(w_oihw, (0, 2, 3, 1)).reshape(Cout, K)
    w2d = w2d.astype(jnp.float32) * scale[:, None]

    # -------- glue: parity-decomposed im2col patches --------
    # patches[n, 2*ph+pw, (7*kh+kw)*Cin+cin, i*Wc+j]
    #     = x_pad[n, cin, 4*i + 2*ph + kh, 4*j + 2*pw + kw]
    # i.e. the im2col column for conv-output position (2*i+ph, 2*j+pw).
    x_pad = jnp.pad(x_nchw, ((0, 0), (0, 0), (3, 3), (3, 3)))
    planes = []
    for ph in range(2):
        for pw in range(2):
            taps = []
            for kh in range(7):
                for kw in range(7):
                    rs, cs = 2 * ph + kh, 2 * pw + kw
                    taps.append(lax.slice(
                        x_pad,
                        (0, 0, rs, cs),
                        (N, Cin, rs + 4 * (Hc - 1) + 1, cs + 4 * (Wc - 1) + 1),
                        (1, 1, 4, 4)))                       # (N, Cin, Hc, Wc)
            p = jnp.stack(taps, axis=1).reshape(N, K, M)     # K=(kh,kw,cin), M=(i,j)
            planes.append(p)
    patches = jnp.stack(planes, axis=1)                      # (N, 4, K, M)

    if compute_dtype is not None:
        patches = patches.astype(compute_dtype)
        w2d = w2d.astype(compute_dtype)

    # -------- Pallas kernel: 4 matmuls + bias + ReLU + fused 3x3/s2 maxpool ----
    def _kernel(p_ref, w_ref, b_ref, o_ref):
        # p_ref: (1, 4, K, M)   parity-decomposed im2col patches
        # w_ref: (Cout, K)      BN-scale-folded conv weights
        # b_ref: (Cout, 1)      folded BN bias
        # o_ref: (1, Cout, M)   pooled output, NCHW-flattened spatial (lane-dense)
        cout, m = o_ref.shape[1], o_ref.shape[2]
        w = w_ref[...]
        b = b_ref[...]

        def conv_plane(p):
            # single fused-K matmul per parity plane; f32 accumulation
            y = jnp.dot(w, p_ref[0, p], preferred_element_type=jnp.float32)
            return jnp.maximum(y + b, 0.0)                   # bias + ReLU

        y_ee = conv_plane(0)   # conv rows 2i,   cols 2j
        y_eo = conv_plane(1)   # conv rows 2i,   cols 2j+1
        y_oe = conv_plane(2)   # conv rows 2i+1, cols 2j
        y_oo = conv_plane(3)   # conv rows 2i+1, cols 2j+1

        # 3x3/s2/p1 maxpool over the conv output == max over 9 shifted planes.
        # ReLU output is >= 0 so zero-fill is equivalent to -inf padding.
        zcol = jnp.zeros((cout, 1), jnp.float32)
        zrow = jnp.zeros((cout, Wc), jnp.float32)
        first_col = (lax.broadcasted_iota(jnp.int32, (cout, m), 1) % Wc) == 0

        def shift_col(x):   # value at (i, j-1); 0 at j == 0
            s = jnp.concatenate([zcol, x[:, :m - 1]], axis=1)
            return jnp.where(first_col, 0.0, s)

        def shift_row(x):   # value at (i-1, j); 0 at i == 0
            return jnp.concatenate([zrow, x[:, :m - Wc]], axis=1)

        r_even = jnp.maximum(jnp.maximum(y_ee, y_eo), shift_col(y_eo))  # conv row 2i
        r_odd = jnp.maximum(jnp.maximum(y_oe, y_oo), shift_col(y_oo))   # conv row 2i+1
        pooled = jnp.maximum(jnp.maximum(r_even, r_odd), shift_row(r_odd))  # + row 2i-1

        o_ref[0] = pooled.astype(o_ref.dtype)

    out = pl.pallas_call(
        _kernel,
        out_shape=jax.ShapeDtypeStruct((N, Cout, M), x_nchw.dtype),
        grid_spec=pltpu.PrefetchScalarGridSpec(
            num_scalar_prefetch=0,
            grid=(N,),
            in_specs=[
                pl.BlockSpec((1, 4, K, M), lambda b: (b, 0, 0, 0)),
                pl.BlockSpec((Cout, K), lambda b: (0, 0)),
                pl.BlockSpec((Cout, 1), lambda b: (0, 0)),
            ],
            out_specs=pl.BlockSpec((1, Cout, M), lambda b: (b, 0, 0)),
        ),
        compiler_params=pltpu.CompilerParams(
            dimension_semantics=("parallel",),
            vmem_limit_bytes=48 * 1024 * 1024,   # headroom for 224x224 stems
        ),
    )(patches, w2d, bias)

    # free contiguous reshape: (N, Cout, Hc*Wc) is already NCHW order
    return out.reshape(N, Cout, Hc, Wc)


if __name__ == "__main__":
    key = jax.random.PRNGKey(0)
    k1, k2, k3, k4, k5, k6 = jax.random.split(key, 6)

    # ResStemIN(w_in=3, w_out=64, bn_norm="BN") at small spatial size.
    N, Cin, H, W, Cout = 2, 3, 16, 16, 64
    x = jax.random.normal(k1, (N, Cin, H, W), jnp.float32)
    w = 0.1 * jax.random.normal(k2, (Cout, Cin, 7, 7), jnp.float32)   # OIHW
    gamma = 1.0 + 0.1 * jax.random.normal(k3, (Cout,), jnp.float32)
    beta = 0.1 * jax.random.normal(k4, (Cout,), jnp.float32)
    running_mean = 0.1 * jax.random.normal(k5, (Cout,), jnp.float32)
    running_var = jnp.abs(jax.random.normal(k6, (Cout,), jnp.float32)) + 0.5

    y = res_stem_in(x, w, gamma, beta, running_mean, running_var)
    y = jax.block_until_ready(y)

    # ---- pure-JAX reference: conv7x7/s2/p3 -> BN(eval) -> ReLU -> maxpool3x3/s2/p1
    x_nhwc = jnp.transpose(x, (0, 2, 3, 1))
    w_hwio = jnp.transpose(w, (2, 3, 1, 0))
    conv = lax.conv_general_dilated(
        x_nhwc, w_hwio, window_strides=(2, 2), padding=((3, 3), (3, 3)),
        dimension_numbers=("NHWC", "HWIO", "NHWC"))
    inv_std = 1.0 / jnp.sqrt(running_var + 1e-5)
    conv = conv * (gamma * inv_std) + (beta - running_mean * gamma * inv_std)
    conv = jnp.maximum(conv, 0.0)
    pooled = lax.reduce_window(
        conv, -jnp.inf, lax.max,
        window_dimensions=(1, 3, 3, 1), window_strides=(1, 2, 2, 1),
        padding=((0, 0), (1, 1), (1, 1), (0, 0)))
    ref = jnp.transpose(pooled, (0, 3, 1, 2))

    assert y.shape == (N, Cout, H // 4, W // 4), y.shape
    assert jnp.allclose(y, ref, atol=1e-3, rtol=1e-3), float(jnp.max(jnp.abs(y - ref)))
    print("KERNEL_OK")
</pallas_src>

<mosaic_0001>
module attributes {stable_mosaic.version = 11 : i64} {
  func.func @_kernel(%arg0: i32, %arg1: memref<1x4x147x16xf32, #tpu.memory_space<vmem>>, %arg2: memref<64x147xf32, #tpu.memory_space<vmem>>, %arg3: memref<64x1xf32, #tpu.memory_space<vmem>>, %arg4: memref<1x64x16xf32, #tpu.memory_space<vmem>>) attributes {dimension_semantics = [#tpu.dimension_semantics<parallel>], iteration_bounds = array<i64: 2>, scalar_prefetch = 0 : i64, scratch_operands = 0 : i64, tpu.core_type = #tpu.core_type<tc>, window_params = [{transform_indices = @transform_0, window_bounds = array<i64: 1, 4, 147, 16>}, {pipeline_mode = #tpu.pipeline_mode<synchronous>, transform_indices = @transform_1, window_bounds = array<i64: 64, 147>}, {pipeline_mode = #tpu.pipeline_mode<synchronous>, transform_indices = @transform_2, window_bounds = array<i64: 64, 1>}, {transform_indices = @transform_3, window_bounds = array<i64: 1, 64, 16>}]} {
    %c0 = arith.constant 0 : index
    %c0_0 = arith.constant 0 : index
    %0 = vector.load %arg2[%c0, %c0_0] : memref<64x147xf32, #tpu.memory_space<vmem>>, vector<64x147xf32>
    %c0_1 = arith.constant 0 : index
    %c0_2 = arith.constant 0 : index
    %1 = vector.load %arg3[%c0_1, %c0_2] : memref<64x1xf32, #tpu.memory_space<vmem>>, vector<64x1xf32>
    %c0_3 = arith.constant 0 : index
    %c0_4 = arith.constant 0 : index
    %c0_5 = arith.constant 0 : index
    %c0_6 = arith.constant 0 : index
    %2 = vector.load %arg1[%c0_3, %c0_4, %c0_5, %c0_6] : memref<1x4x147x16xf32, #tpu.memory_space<vmem>>, vector<1x1x147x16xf32>
    %3 = vector.shape_cast %2 : vector<1x1x147x16xf32> to vector<147x16xf32>
    %cst = arith.constant dense<0.000000e+00> : vector<64x16xf32>
    %4 = tpu.matmul %0, %3, %cst {dimension_numbers = #tpu.dot_dimension_numbers<[1], [0], [0], [1], [0, 0, 1, 1], [], []>} : vector<64x147xf32>, vector<147x16xf32>, vector<64x16xf32> -> vector<64x16xf32>
    %5 = vector.broadcast %1 : vector<64x1xf32> to vector<64x16xf32>
    %6 = arith.addf %4, %5 : vector<64x16xf32>
    %cst_7 = arith.constant 0.000000e+00 : f32
    %7 = vector.broadcast %cst_7 : f32 to vector<64x16xf32>
    %8 = arith.maximumf %6, %7 : vector<64x16xf32>
    %c0_8 = arith.constant 0 : index
    %c1 = arith.constant 1 : index
    %c0_9 = arith.constant 0 : index
    %c0_10 = arith.constant 0 : index
    %9 = vector.load %arg1[%c0_8, %c1, %c0_9, %c0_10] : memref<1x4x147x16xf32, #tpu.memory_space<vmem>>, vector<1x1x147x16xf32>
    %10 = vector.shape_cast %9 : vector<1x1x147x16xf32> to vector<147x16xf32>
    %cst_11 = arith.constant dense<0.000000e+00> : vector<64x16xf32>
    %11 = tpu.matmul %0, %10, %cst_11 {dimension_numbers = #tpu.dot_dimension_numbers<[1], [0], [0], [1], [0, 0, 1, 1], [], []>} : vector<64x147xf32>, vector<147x16xf32>, vector<64x16xf32> -> vector<64x16xf32>
    %12 = vector.broadcast %1 : vector<64x1xf32> to vector<64x16xf32>
    %13 = arith.addf %11, %12 : vector<64x16xf32>
    %cst_12 = arith.constant 0.000000e+00 : f32
    %14 = vector.broadcast %cst_12 : f32 to vector<64x16xf32>
    %15 = arith.maximumf %13, %14 : vector<64x16xf32>
    %c0_13 = arith.constant 0 : index
    %c2 = arith.constant 2 : index
    %c0_14 = arith.constant 0 : index
    %c0_15 = arith.constant 0 : index
    %16 = vector.load %arg1[%c0_13, %c2, %c0_14, %c0_15] : memref<1x4x147x16xf32, #tpu.memory_space<vmem>>, vector<1x1x147x16xf32>
    %17 = vector.shape_cast %16 : vector<1x1x147x16xf32> to vector<147x16xf32>
    %cst_16 = arith.constant dense<0.000000e+00> : vector<64x16xf32>
    %18 = tpu.matmul %0, %17, %cst_16 {dimension_numbers = #tpu.dot_dimension_numbers<[1], [0], [0], [1], [0, 0, 1, 1], [], []>} : vector<64x147xf32>, vector<147x16xf32>, vector<64x16xf32> -> vector<64x16xf32>
    %19 = vector.broadcast %1 : vector<64x1xf32> to vector<64x16xf32>
    %20 = arith.addf %18, %19 : vector<64x16xf32>
    %cst_17 = arith.constant 0.000000e+00 : f32
    %21 = vector.broadcast %cst_17 : f32 to vector<64x16xf32>
    %22 = arith.maximumf %20, %21 : vector<64x16xf32>
    %c0_18 = arith.constant 0 : index
    %c3 = arith.constant 3 : index
    %c0_19 = arith.constant 0 : index
    %c0_20 = arith.constant 0 : index
    %23 = vector.load %arg1[%c0_18, %c3, %c0_19, %c0_20] : memref<1x4x147x16xf32, #tpu.memory_space<vmem>>, vector<1x1x147x16xf32>
    %24 = vector.shape_cast %23 : vector<1x1x147x16xf32> to vector<147x16xf32>
    %cst_21 = arith.constant dense<0.000000e+00> : vector<64x16xf32>
    %25 = tpu.matmul %0, %24, %cst_21 {dimension_numbers = #tpu.dot_dimension_numbers<[1], [0], [0], [1], [0, 0, 1, 1], [], []>} : vector<64x147xf32>, vector<147x16xf32>, vector<64x16xf32> -> vector<64x16xf32>
    %26 = vector.broadcast %1 : vector<64x1xf32> to vector<64x16xf32>
    %27 = arith.addf %25, %26 : vector<64x16xf32>
    %cst_22 = arith.constant 0.000000e+00 : f32
    %28 = vector.broadcast %cst_22 : f32 to vector<64x16xf32>
    %29 = arith.maximumf %27, %28 : vector<64x16xf32>
    %cst_23 = arith.constant 0.000000e+00 : f32
    %30 = vector.broadcast %cst_23 : f32 to vector<64x1xf32>
    %cst_24 = arith.constant 0.000000e+00 : f32
    %31 = vector.broadcast %cst_24 : f32 to vector<64x4xf32>
    %32 = tpu.iota {dimensions = array<i32: 1>} : vector<64x16xi32>
    %c4_i32 = arith.constant 4 : i32
    %c0_i32 = arith.constant 0 : i32
    %33 = arith.cmpi eq, %c4_i32, %c0_i32 : i32
    %c1_i32 = arith.constant 1 : i32
    %34 = arith.select %33, %c1_i32, %c4_i32 : i32
    %35 = vector.broadcast %34 : i32 to vector<64x16xi32>
    %36 = arith.remsi %32, %35 : vector<64x16xi32>
    %c0_i32_25 = arith.constant 0 : i32
    %37 = vector.broadcast %c0_i32_25 : i32 to vector<64x16xi32>
    %38 = arith.cmpi ne, %36, %37 : vector<64x16xi32>
    %c0_i32_26 = arith.constant 0 : i32
    %39 = vector.broadcast %c0_i32_26 : i32 to vector<64x16xi32>
    %40 = arith.cmpi slt, %36, %39 : vector<64x16xi32>
    %c0_i32_27 = arith.constant 0 : i32
    %41 = arith.cmpi slt, %34, %c0_i32_27 : i32
    %42 = vector.broadcast %41 : i1 to vector<64x16xi1>
    %43 = vector.broadcast %42 : vector<64x16xi1> to vector<64x16xi1>
    %44 = arith.xori %40, %43 : vector<64x16xi1>
    %45 = arith.andi %44, %38 : vector<64x16xi1>
    %46 = vector.broadcast %34 : i32 to vector<64x16xi32>
    %47 = arith.addi %36, %46 : vector<64x16xi32>
    %48 = arith.select %45, %47, %36 : vector<64x16xi1>, vector<64x16xi32>
    %c0_i32_28 = arith.constant 0 : i32
    %49 = vector.broadcast %c0_i32_28 : i32 to vector<64x16xi32>
    %50 = arith.cmpi eq, %48, %49 : vector<64x16xi32>
    %51 = arith.maximumf %8, %15 : vector<64x16xf32>
    %52 = vector.extract_strided_slice %15 {offsets = [0, 0], sizes = [64, 15], strides = [1, 1]} : vector<64x16xf32> to vector<64x15xf32>
    %53 = tpu.concatenate %30, %52 in 1 : vector<64x1xf32>, vector<64x15xf32> -> vector<64x16xf32>
    %cst_29 = arith.constant 0.000000e+00 : f32
    %54 = vector.broadcast %cst_29 : f32 to vector<64x16xf32>
    %55 = arith.select %50, %54, %53 : vector<64x16xi1>, vector<64x16xf32>
    %56 = arith.maximumf %51, %55 : vector<64x16xf32>
    %57 = arith.maximumf %22, %29 : vector<64x16xf32>
    %58 = vector.extract_strided_slice %29 {offsets = [0, 0], sizes = [64, 15], strides = [1, 1]} : vector<64x16xf32> to vector<64x15xf32>
    %59 = tpu.concatenate %30, %58 in 1 : vector<64x1xf32>, vector<64x15xf32> -> vector<64x16xf32>
    %cst_30 = arith.constant 0.000000e+00 : f32
    %60 = vector.broadcast %cst_30 : f32 to vector<64x16xf32>
    %61 = arith.select %50, %60, %59 : vector<64x16xi1>, vector<64x16xf32>
    %62 = arith.maximumf %57, %61 : vector<64x16xf32>
    %63 = arith.maximumf %56, %62 : vector<64x16xf32>
    %64 = vector.extract_strided_slice %62 {offsets = [0, 0], sizes = [64, 12], strides = [1, 1]} : vector<64x16xf32> to vector<64x12xf32>
    %65 = tpu.concatenate %31, %64 in 1 : vector<64x4xf32>, vector<64x12xf32> -> vector<64x16xf32>
    %66 = arith.maximumf %63, %65 : vector<64x16xf32>
    %c0_31 = arith.constant 0 : index
    %c0_32 = arith.constant 0 : index
    %c0_33 = arith.constant 0 : index
    %67 = vector.load %arg4[%c0_31, %c0_32, %c0_33] : memref<1x64x16xf32, #tpu.memory_space<vmem>>, vector<1x64x16xf32>
    %68 = vector.shape_cast %67 : vector<1x64x16xf32> to vector<64x16xf32>
    %69 = vector.shape_cast %66 : vector<64x16xf32> to vector<1x64x16xf32>
    tpu.vector_store %arg4[%c0_31, %c0_32, %c0_33], %69 {strides = array<i32>} : memref<1x64x16xf32, #tpu.memory_space<vmem>>, vector<1x64x16xf32>,
    return
  }
  func.func @transform_0(%arg0: i32) -> (i32, i32, i32, i32) {
    %c0_i32 = arith.constant 0 : i32
    %c0_i32_0 = arith.constant 0 : i32
    %c0_i32_1 = arith.constant 0 : i32
    %c0_i32_2 = arith.constant 0 : i32
    return %arg0, %c0_i32, %c0_i32_0, %c0_i32_1 : i32, i32, i32, i32
  }
  func.func @transform_1(%arg0: i32) -> (i32, i32) {
    %c0_i32 = arith.constant 0 : i32
    %c0_i32_0 = arith.constant 0 : i32
    %c0_i32_1 = arith.constant 0 : i32
    return %c0_i32, %c0_i32_0 : i32, i32
  }
  func.func @transform_2(%arg0: i32) -> (i32, i32) {
    %c0_i32 = arith.constant 0 : i32
    %c0_i32_0 = arith.constant 0 : i32
    %c0_i32_1 = arith.constant 0 : i32
    return %c0_i32, %c0_i32_0 : i32, i32
  }
  func.func @transform_3(%arg0: i32) -> (i32, i32, i32) {
    %c0_i32 = arith.constant 0 : i32
    %c0_i32_0 = arith.constant 0 : i32
    %c0_i32_1 = arith.constant 0 : i32
    return %arg0, %c0_i32, %c0_i32_0 : i32, i32, i32
  }
}

</mosaic_0001>

<bundles_post_ra>
// kernel: tpu_custom_call.1
= control target key start
LH: loop header
LB: loop body
LE: loop exit
PB: predicated region body
PF: predicated region fallthrough
CT: control target
= control target key end

     0   :  { %s1146_s12 = smov 0   ;;  %s1719_s0 = inlined_call_operand.vmem [shape: f32[2,4,147,16], index: 0, kind: input, shape index: {}]   ;;  %s1720_s1 = inlined_call_operand.vmem [shape: f32[64,147], index: 1, kind: input, shape index: {}]   ;;  %s1721_s2 = inlined_call_operand.vmem [shape: f32[64,1], index: 2, kind: input, shape index: {}]   ;;  %s1722_s3 = inlined_call_operand.vmem [shape: f32[2,64,16], index: 3, kind: output, shape index: {}]  }
   0x1 LB: > { %s977_s13 = sadd.s32 4294967295, %s1121_s12   ;;  %p981_p0 = scmp.ge.s32.totalorder %s1121_s12, 1  ;;  %s1121_s12 = sphi %s1146_s12, %s13_s12  }
   0x2   : > { %p137_p1 = scmp.lt.s32.totalorder %s1121_s12, 3 }
   0x4   : > { %p138_p2 = pnand %p981_p0, %p137_p1 }
   0x5   : > { %p161_p3 = scmp.lt.s32.totalorder (!%p138_p2), %s977_s13, 1  ;;  %s1124_s16 = smov (!%p138_p2), 1  }
   0x6   : > { %141 = sbr.rel (%p138_p2) target bundleno = 526 (0x20e), region = 32  ;;  %s1125_s18 = smov (!%p138_p2), 4  }
   0xb   : > { %s1726_s13 = smov (!%p161_p3, %s977_s13), 1  ;;  %vm279_vm0 = vcmask 1042432   ;;  %v1179_v12 = vld [vmem:[%s1720_s1 + $0x8] sm:$0xff]  ;;  %vm254_vm1 = vcmask 154624   ;;  %v1123_v25 = vmov 0   ;;  %v1202_v26 = vld [vmem:[%s1720_s1 + $0x18] sm:$0xff] }
   0xc   : > { %s1100_s14 = smul.u32 608, %s1726_s13  ;;  %1112 = vset.pattern.permute.xlu0 %v1123_v25  ;;  %1113 = vset.pattern.permute.xlu1 %v1123_v25  ;;  %v187_v37 = vld [vmem:[%s1721_s2] sm:$0xff]  ;;  %v1227_v40 = vld [vmem:[%s1720_s1 + $0x28] sm:$0xff]  ;;  %v189_v53 = vld [vmem:[%s1721_s2 + $0x10] sm:$0xff]  ;;  %vm767_vm2 = vcmask 7168   ;;  %s1080_s19 = sshll.u32 %s1726_s13, 6 }
   0xd   : > { %216 = vperm.xlu0 %1112, %v187_v37   ;;  %v188_v49 = vld [vmem:[%s1721_s2 + $0x8] sm:$0xff]  ;;  %v1256_v56 = vld [vmem:[%s1720_s1 + $0x38] sm:$0xff]  ;;  %226 = vperm.xlu1 %1113, %v189_v53   ;;  %v1263_v59 = vld [vmem:[%s1720_s1] sm:$0xff]  ;;  %vm896_vm4 = vcmask 31744   ;;  %s1684_s22 = scalar_lea.vmem %s1722_s3, %s1080_s19  ;;  %vm913_vm5 = vcmask 130048  }
   0xe   : > { %s1160_s17 = scalar_lea.vmem %s1719_s0, %s1100_s14  ;;  %1114 = vset.pattern.permute.xlu2 %v1123_v25  ;;  %v183_v37 = vld [vmem:[%s1720_s1 + $0x60] sm:$0xff] }
   0xf   : > { %v210_v0 = vld [vmem:[%s1160_s17 + $0x78] sm:$0xff]  ;;  %v213_v1 = vld [vmem:[%s1160_s17 + $0x90] sm:$0x7]  ;;  %v1012_v3 = vld [vmem:[%s1160_s17 + $0x128] sm:$0x7] }
  0x10   : > { %v1009_v2 = vld [vmem:[%s1160_s17 + $0x110] sm:$0xff]  ;;  %283 = vmatpush.msra.mxu0 %v210_v0  ;;  %985 = vmatpush.msk.msra.mxu1 %vm279_vm0, %v213_v1  ;;  %v212_v5 = vld [vmem:[%s1160_s17 + $0x88] sm:$0xff]  ;;  %v1011_v7 = vld [vmem:[%s1160_s17 + $0x120] sm:$0xff] }
  0x11   : > { %v209_v4 = vld [vmem:[%s1160_s17 + $0x70] sm:$0xff]  ;;  %396 = vmatpush.msra.mxu2 %v1009_v2  ;;  %1013 = vmatpush.msk.msra.mxu3 %vm279_vm0, %v1012_v3  ;;  %v1008_v6 = vld [vmem:[%s1160_s17 + $0x108] sm:$0xff]  ;;  %v211_v9 = vld [vmem:[%s1160_s17 + $0x80] sm:$0xff] }
  0x12   : > { %v208_v8 = vld [vmem:[%s1160_s17 + $0x68] sm:$0xff]  ;;  %284 = vmatpush.msra.mxu0 %v209_v4  ;;  %338 = vmatpush.msra.mxu1 %v212_v5  ;;  %v1007_v10 = vld [vmem:[%s1160_s17 + $0x100] sm:$0xff]  ;;  %v1010_v11 = vld [vmem:[%s1160_s17 + $0x118] sm:$0xff] }
  0x13   : > { %397 = vmatpush.msra.mxu2 %v1008_v6  ;;  %451 = vmatpush.msra.mxu3 %v1011_v7  ;;  %v207_v13 = vld [vmem:[%s1160_s17 + $0x60] sm:$0xff]  ;;  %v1006_v14 = vld [vmem:[%s1160_s17 + $0xf8] sm:$0xff]  ;;  %v1037_v16 = vld [vmem:[%s1160_s17 + $0x1a8] sm:$0xff] }
  0x14   : > { %285 = vmatpush.msra.mxu0 %v208_v8  ;;  %339 = vmatpush.msra.mxu1 %v211_v9  ;;  %v1040_v15 = vld [vmem:[%s1160_s17 + $0x1c0] sm:$0x7]  ;;  %v206_v17 = vld [vmem:[%s1160_s17 + $0x58] sm:$0xff]  ;;  %v1005_v18 = vld [vmem:[%s1160_s17 + $0xf0] sm:$0xff] }
  0x15   : > { %398 = vmatpush.msra.mxu2 %v1007_v10  ;;  %452 = vmatpush.msra.mxu3 %v1010_v11  ;;  %v1036_v19 = vld [vmem:[%s1160_s17 + $0x1a0] sm:$0xff]  ;;  %v205_v20 = vld [vmem:[%s1160_s17 + $0x50] sm:$0xff]  ;;  %v1004_v21 = vld [vmem:[%s1160_s17 + $0xe8] sm:$0xff] }
  0x16   : > { %986 = vmatmul.msk.f32.vlgmr.msra.gmra.mxu1 %vm254_vm1, %v1179_v12  ;;  %1014 = vmatmul.msk.f32.vlgmr.msra.gmra.mxu3 %vm254_vm1, %v1179_v12  ;;  %v1035_v22 = vld [vmem:[%s1160_s17 + $0x198] sm:$0xff]  ;;  %v204_v23 = vld [vmem:[%s1160_s17 + $0x48] sm:$0xff]  ;;  %v1003_v24 = vld [vmem:[%s1160_s17 + $0xe0] sm:$0xff] }
  0x17   : > { %286 = vmatpush.msra.mxu0 %v207_v13  ;;  %399 = vmatpush.msra.mxu2 %v1006_v14  ;;  %v203_v27 = vld [vmem:[%s1160_s17 + $0x40] sm:$0xff]  ;;  %v1002_v28 = vld [vmem:[%s1160_s17 + $0xd8] sm:$0xff]  ;;  %v1034_v29 = vld [vmem:[%s1160_s17 + $0x190] sm:$0xff] }
  0x18   : > { %1041 = vmatpush.msk.msrb.mxu3 %vm279_vm0, %v1040_v15  ;;  %509 = vmatpush.msrb.mxu1 %v1037_v16  ;;  %v1039_v30 = vld [vmem:[%s1160_s17 + $0x1b8] sm:$0xff]  ;;  %v1001_v32 = vld [vmem:[%s1160_s17 + $0xd0] sm:$0xff]  ;;  %v1033_v33 = vld [vmem:[%s1160_s17 + $0x188] sm:$0xff] }
  0x19   : > { %287 = vmatpush.msra.mxu0 %v206_v17  ;;  %400 = vmatpush.msra.mxu2 %v1005_v18  ;;  %v202_v31 = vld [vmem:[%s1160_s17 + $0x38] sm:$0xff]  ;;  %v201_v34 = vld [vmem:[%s1160_s17 + $0x30] sm:$0xff]  ;;  %v1000_v35 = vld [vmem:[%s1160_s17 + $0xc8] sm:$0xff] }
  0x1a   : > { %510 = vmatpush.msrb.mxu1 %v1036_v19  ;;  %564 = vmatpush.msrb.mxu3 %v1039_v30  ;;  %v1032_v36 = vld [vmem:[%s1160_s17 + $0x180] sm:$0xff]  ;;  %v200_v38 = vld [vmem:[%s1160_s17 + $0x28] sm:$0xff]  ;;  %v1038_v41 = vld [vmem:[%s1160_s17 + $0x1b0] sm:$0xff] }
  0x1b   : > { %288 = vmatpush.msra.mxu0 %v205_v20  ;;  %401 = vmatpush.msra.mxu2 %v1004_v21  ;;  %v999_v39 = vld [vmem:[%s1160_s17 + $0xc0] sm:$0xff]  ;;  %v998_v43 = vld [vmem:[%s1160_s17 + $0xb8] sm:$0xff]  ;;  %v997_v46 = vld [vmem:[%s1160_s17 + $0xb0] sm:$0xff] }
  0x1c   : > { %511 = vmatpush.msrb.mxu1 %v1035_v22  ;;  %v199_v42 = vld [vmem:[%s1160_s17 + $0x20] sm:$0xff]  ;;  %565 = vmatpush.msrb.mxu3 %v1038_v41  ;;  %v1031_v44 = vld [vmem:[%s1160_s17 + $0x178] sm:$0xff]  ;;  %v1030_v48 = vld [vmem:[%s1160_s17 + $0x170] sm:$0xff] }
  0x1d   : > { %289 = vmatpush.msra.mxu0 %v204_v23  ;;  %402 = vmatpush.msra.mxu2 %v1003_v24  ;;  %v198_v45 = vld [vmem:[%s1160_s17 + $0x18] sm:$0xff]  ;;  %v197_v50 = vld [vmem:[%s1160_s17 + $0x10] sm:$0xff]  ;;  %v996_v51 = vld [vmem:[%s1160_s17 + $0xa8] sm:$0xff] }
  0x1e   : > { %987 = vmatmul.msk.f32.gmra.mxu1 %vm254_vm1, %v1202_v26  ;;  %1015 = vmatmul.msk.f32.gmra.mxu3 %vm254_vm1, %v1202_v26  ;;  %v1068_v47 = vld [vmem:[%s1160_s17 + $0x258] sm:$0x7]  ;;  %v1029_v52 = vld [vmem:[%s1160_s17 + $0x168] sm:$0xff]  ;;  %v995_v55 = vld [vmem:[%s1160_s17 + $0xa0] sm:$0xff] }
  0x1f   : > { %290 = vmatpush.msra.mxu0 %v203_v27  ;;  %403 = vmatpush.msra.mxu2 %v1002_v28  ;;  %v196_v54 = vld [vmem:[%s1160_s17 + $0x8] sm:$0xff]  ;;  %v195_v57 = vld [vmem:[%s1160_s17] sm:$0xff]  ;;  %v994_v58 = vld [vmem:[%s1160_s17 + $0x98] sm:$0xff] }
  0x20   : > { %512 = vmatpush.msrb.mxu1 %v1034_v29  ;;  %1097 = vmatpush.msk.msra.mxu3 %vm279_vm0, %v1068_v47  ;;  %v1065_v60 = vld [vmem:[%s1160_s17 + $0x240] sm:$0xff]  ;;  %v1064_v62 = vld [vmem:[%s1160_s17 + $0x238] sm:$0xff]  ;;  %v1067_v63 = vld [vmem:[%s1160_s17 + $0x250] sm:$0xff] }
  0x21   : > { %291 = vmatpush.msra.mxu0 %v202_v31  ;;  %404 = vmatpush.msra.mxu2 %v1001_v32  ;;  %v1028_v61 = vld [vmem:[%s1160_s17 + $0x160] sm:$0xff]  ;;  %v1027_v0 = vld [vmem:[%s1160_s17 + $0x158] sm:$0xff]  ;;  %v1063_v2 = vld [vmem:[%s1160_s17 + $0x230] sm:$0xff] }
  0x22   : > { %513 = vmatpush.msrb.mxu1 %v1033_v33  ;;  %221 = vperm.xlu0 %1112, %v188_v49   ;;  %v190_v1 = vld [vmem:[%s1721_s2 + $0x18] sm:$0xff]  ;;  %v1284_v3 = vld [vmem:[%s1720_s1 + $0x48] sm:$0xff]  ;;  %v1026_v5 = vld [vmem:[%s1160_s17 + $0x150] sm:$0xff] }
  0x23   : > { %292 = vmatpush.msra.mxu0 %v201_v34  ;;  %405 = vmatpush.msra.mxu2 %v1000_v35  ;;  %v1062_v4 = vld [vmem:[%s1160_s17 + $0x228] sm:$0xff]  ;;  %v1291_v6 = vld [vmem:[%s1720_s1 + $0x10] sm:$0xff]  ;;  %v1061_v7 = vld [vmem:[%s1160_s17 + $0x220] sm:$0xff] }
  0x24   : > { %514 = vmatpush.msrb.mxu1 %v1032_v36  ;;  %1098 = vmatpush.msra.mxu3 %v1067_v63  ;;  %v1025_v8 = vld [vmem:[%s1160_s17 + $0x148] sm:$0xff]  ;;  %v1060_v9 = vld [vmem:[%s1160_s17 + $0x218] sm:$0xff]  ;;  %v1024_v10 = vld [vmem:[%s1160_s17 + $0x140] sm:$0xff] }
  0x25   : > { %293 = vmatpush.msra.mxu0 %v200_v38  ;;  %406 = vmatpush.msra.mxu2 %v999_v39  ;;  %v1066_v11 = vld [vmem:[%s1160_s17 + $0x248] sm:$0xff]  ;;  %v1059_v13 = vld [vmem:[%s1160_s17 + $0x210] sm:$0xff]  ;;  %v1023_v14 = vld [vmem:[%s1160_s17 + $0x138] sm:$0xff] }
  0x26   : > { %988 = vmatmul.msk.f32.gmra.mxu1 %vm254_vm1, %v1227_v40  ;;  %1016 = vmatmul.msk.f32.gmra.mxu3 %vm254_vm1, %v1227_v40  ;;  %v1310_v15 = vld [vmem:[%s1720_s1 + $0x58] sm:$0xff]  ;;  %v1058_v16 = vld [vmem:[%s1160_s17 + $0x208] sm:$0xff]  ;;  %v1022_v17 = vld [vmem:[%s1160_s17 + $0x130] sm:$0xff] }
  0x27   : > { %294 = vmatpush.msra.mxu0 %v199_v42  ;;  %407 = vmatpush.msra.mxu2 %v998_v43  ;;  %v1317_v18 = vld [vmem:[%s1720_s1 + $0x20] sm:$0xff]  ;;  %v1056_v20 = vld [vmem:[%s1160_s17 + $0x1f8] sm:$0xff]  ;;  %v1055_v21 = vld [vmem:[%s1160_s17 + $0x1f0] sm:$0xff] }
  0x28   : > { %515 = vmatpush.msrb.mxu1 %v1031_v44  ;;  %231 = vperm.xlu1 %1113, %v190_v1   ;;  %v1057_v19 = vld [vmem:[%s1160_s17 + $0x200] sm:$0xff]  ;;  %v1331_v22 = vld [vmem:[%s1720_s1 + $0x68] sm:$0xff]  ;;  %v1337_v24 = vld [vmem:[%s1720_s1 + $0x30] sm:$0xff] }
  0x29   : > { %295 = vmatpush.msra.mxu0 %v198_v45  ;;  %408 = vmatpush.msra.mxu2 %v997_v46  ;;  %v1054_v23 = vld [vmem:[%s1160_s17 + $0x1e8] sm:$0xff]  ;;  %v1053_v25 = vld [vmem:[%s1160_s17 + $0x1e0] sm:$0xff]  ;;  %v1052_v27 = vld [vmem:[%s1160_s17 + $0x1d8] sm:$0xff] }
  0x2a   : > { %516 = vmatpush.msrb.mxu1 %v1030_v48  ;;  %1099 = vmatpush.msra.mxu3 %v1066_v11  ;;  %v193_v28 = vld [vmem:[%s1721_s2 + $0x30] sm:$0xff]  ;;  %v1354_v30 = vld [vmem:[%s1720_s1 + $0x78] sm:$0xff]  ;;  %v179_v31 = vld [vmem:[%s1720_s1 + $0x40] sm:$0xff] }
  0x2b   : > { %296 = vmatpush.msra.mxu0 %v197_v50  ;;  %409 = vmatpush.msra.mxu2 %v996_v51  ;;  %v1051_v29 = vld [vmem:[%s1160_s17 + $0x1d0] sm:$0xff]  ;;  %v1050_v32 = vld [vmem:[%s1160_s17 + $0x1c8] sm:$0xff]  ;;  %v191_v33 = vld [vmem:[%s1721_s2 + $0x20] sm:$0xff] }
  0x2c   : > { %517 = vmatpush.msrb.mxu1 %v1029_v52  ;;  %246 = vperm.xlu0 %1112, %v193_v28   ;;  %v194_v34 = vld [vmem:[%s1721_s2 + $0x38] sm:$0xff]  ;;  %v181_v35 = vld [vmem:[%s1720_s1 + $0x50] sm:$0xff]  ;;  %v192_v36 = vld [vmem:[%s1721_s2 + $0x28] sm:$0xff] }
  0x2d   : > { %297 = vmatpush.msra.mxu0 %v196_v54  ;;  %410 = vmatpush.msra.mxu2 %v995_v55  ;;  %v185_v38 = vld [vmem:[%s1720_s1 + $0x70] sm:$0xff] }
  0x2e   : > { %989 = vmatmul.msk.f32.gmra.mxu1 %vm254_vm1, %v1256_v56  ;;  %1017 = vmatmul.msk.f32.gmra.mxu3 %vm254_vm1, %v1256_v56 }
  0x2f   : > { %298 = vmatpush.msra.mxu0 %v195_v57  ;;  %411 = vmatpush.msra.mxu2 %v994_v58 }
  0x30   : > { %299 = vmatmul.f32.vlgmr.msra.gmra.mxu0 %v1263_v59  ;;  %412 = vmatmul.f32.vlgmr.msra.gmra.mxu2 %v1263_v59 }
  0x31   : > { %1069 = vmatpush.msk.msrb.mxu2 %vm279_vm0, %v1068_v47  ;;  %622 = vmatpush.msrb.mxu0 %v1065_v60 }
  0x32   : > { %518 = vmatpush.msrb.mxu1 %v1028_v61  ;;  %236 = vperm.xlu2 %1114, %v191_v33  }
  0x33   : > { %623 = vmatpush.msrb.mxu0 %v1064_v62  ;;  %677 = vmatpush.msrb.mxu2 %v1067_v63 }
  0x34   : > { %519 = vmatpush.msrb.mxu1 %v1027_v0  ;;  %251 = vperm.xlu1 %1113, %v194_v34  }
  0x35   : > { %624 = vmatpush.msrb.mxu0 %v1063_v2  ;;  %678 = vmatpush.msrb.mxu2 %v1066_v11 }
  0x36   : > { %990 = vmatmul.msk.f32.gmra.mxu1 %vm254_vm1, %v1284_v3  ;;  %1018 = vmatmul.msk.f32.gmra.mxu3 %vm254_vm1, %v1284_v3 }
  0x37   : > { %625 = vmatpush.msrb.mxu0 %v1062_v4  ;;  %520 = vmatpush.msrb.mxu1 %v1026_v5 }
  0x38   : > { %302 = vmatmul.f32.gmra.mxu0 %v1291_v6  ;;  %415 = vmatmul.f32.gmra.mxu2 %v1291_v6 }
  0x39   : > { %626 = vmatpush.msrb.mxu0 %v1061_v7  ;;  %521 = vmatpush.msrb.mxu1 %v1025_v8 }
  0x3a   : > { %241 = vperm.xlu2 %1114, %v192_v36  }
  0x3b   : > { %627 = vmatpush.msrb.mxu0 %v1060_v9  ;;  %522 = vmatpush.msrb.mxu1 %v1024_v10 }
  0x3d   : > { %628 = vmatpush.msrb.mxu0 %v1059_v13  ;;  %523 = vmatpush.msrb.mxu1 %v1023_v14 }
  0x3e   : > { %991 = vmatmul.msk.f32.gmra.mxu1 %vm254_vm1, %v1310_v15  ;;  %1019 = vmatmul.msk.f32.gmra.mxu3 %vm254_vm1, %v1310_v15 }
  0x3f   : > { %629 = vmatpush.msrb.mxu0 %v1058_v16  ;;  %524 = vmatpush.msrb.mxu1 %v1022_v17 }
  0x40   : > { %305 = vmatmul.f32.gmra.mxu0 %v1317_v18  ;;  %418 = vmatmul.f32.gmra.mxu2 %v1317_v18 }
  0x41   : > { %630 = vmatpush.msrb.mxu0 %v1057_v19  ;;  %1081 = vmatpush.msra.mxu1 %v1065_v60 }
  0x43   : > { %631 = vmatpush.msrb.mxu0 %v1056_v20  ;;  %1082 = vmatpush.msra.mxu1 %v1064_v62 }
  0x45   : > { %632 = vmatpush.msrb.mxu0 %v1055_v21  ;;  %1083 = vmatpush.msra.mxu1 %v1063_v2 }
  0x46   : > { %992 = vmatmul.msk.f32.gmra.mxu1 %vm254_vm1, %v1331_v22  ;;  %1020 = vmatmul.msk.f32.gmra.mxu3 %vm254_vm1, %v1331_v22 }
  0x47   : > { %633 = vmatpush.msrb.mxu0 %v1054_v23  ;;  %1084 = vmatpush.msra.mxu1 %v1062_v4 }
  0x48   : > { %308 = vmatmul.f32.gmra.mxu0 %v1337_v24  ;;  %421 = vmatmul.f32.gmra.mxu2 %v1337_v24 }
  0x49   : > { %634 = vmatpush.msrb.mxu0 %v1053_v25  ;;  %1085 = vmatpush.msra.mxu1 %v1061_v7 }
  0x4b   : > { %635 = vmatpush.msrb.mxu0 %v1052_v27  ;;  %1086 = vmatpush.msra.mxu1 %v1060_v9 }
  0x4d   : > { %636 = vmatpush.msrb.mxu0 %v1051_v29  ;;  %1087 = vmatpush.msra.mxu1 %v1059_v13 }
  0x4e   : > { %993 = vmatmul.msk.f32.gmra.mxu1 %vm254_vm1, %v1354_v30  ;;  %1021 = vmatmul.msk.f32.gmra.mxu3 %vm254_vm1, %v1354_v30 }
  0x4f   : > { %637 = vmatpush.msrb.mxu0 %v1050_v32  ;;  %1088 = vmatpush.msra.mxu1 %v1058_v16 }
  0x50   : > { %311 = vmatmul.f32.gmra.mxu0 %v179_v31  ;;  %424 = vmatmul.f32.gmra.mxu2 %v179_v31 }
  0x51   : > { %1089 = vmatpush.msra.mxu1 %v1057_v19 }
  0x53   : > { %1090 = vmatpush.msra.mxu1 %v1056_v20 }
  0x55   : > { %1091 = vmatpush.msra.mxu1 %v1055_v21 }
  0x56   : > { %525 = vmatmul.f32.vlgmr.msrb.gmra.mxu1 %v1263_v59  ;;  %1042 = vmatmul.msk.f32.vlgmr.msrb.gmra.mxu3 %vm254_vm1, %v1179_v12 }
  0x57   : > { %1092 = vmatpush.msra.mxu1 %v1054_v23 }
  0x58   : > { %314 = vmatmul.f32.gmra.mxu0 %v181_v35  ;;  %427 = vmatmul.f32.gmra.mxu2 %v181_v35 }
  0x59   : > { %1093 = vmatpush.msra.mxu1 %v1053_v25 }
  0x5b   : > { %1094 = vmatpush.msra.mxu1 %v1052_v27 }
  0x5d   : > { %1095 = vmatpush.msra.mxu1 %v1051_v29 }
  0x5e   : > { %528 = vmatmul.f32.gmra.mxu1 %v1291_v6  ;;  %1043 = vmatmul.msk.f32.gmra.mxu3 %vm254_vm1, %v1202_v26 }
  0x5f   : > { %1096 = vmatpush.msra.mxu1 %v1050_v32 }
  0x60   : > { %317 = vmatmul.f32.gmra.mxu0 %v183_v37  ;;  %430 = vmatmul.f32.gmra.mxu2 %v183_v37 }
  0x66   : > { %531 = vmatmul.f32.gmra.mxu1 %v1317_v18  ;;  %1044 = vmatmul.msk.f32.gmra.mxu3 %vm254_vm1, %v1227_v40 }
  0x68   : > { %320 = vmatmul.f32.gmra.mxu0 %v185_v38  ;;  %433 = vmatmul.f32.gmra.mxu2 %v185_v38 }
  0x6e   : > { %534 = vmatmul.f32.gmra.mxu1 %v1337_v24  ;;  %1045 = vmatmul.msk.f32.gmra.mxu3 %vm254_vm1, %v1256_v56 }
  0x70   : > { %638 = vmatmul.f32.vlgmr.msrb.gmra.mxu0 %v1263_v59  ;;  %1070 = vmatmul.msk.f32.vlgmr.msrb.gmra.mxu2 %vm254_vm1, %v1179_v12 }
  0x76   : > { %537 = vmatmul.f32.gmra.mxu1 %v179_v31  ;;  %1046 = vmatmul.msk.f32.gmra.mxu3 %vm254_vm1, %v1284_v3 }
  0x78   : > { %641 = vmatmul.f32.gmra.mxu0 %v1291_v6  ;;  %1071 = vmatmul.msk.f32.gmra.mxu2 %vm254_vm1, %v1202_v26 }
  0x7e   : > { %540 = vmatmul.f32.gmra.mxu1 %v181_v35  ;;  %1047 = vmatmul.msk.f32.gmra.mxu3 %vm254_vm1, %v1310_v15 }
  0x7f   : > { %v1422_v42 = vpop.permute.xlu0 %216  ;;  %v1435_v57 = vpop.permute.xlu1 %226 }
  0x80   : > { %644 = vmatmul.f32.gmra.mxu0 %v1317_v18  ;;  %1072 = vmatmul.msk.f32.gmra.mxu2 %vm254_vm1, %v1227_v40 }
  0x86   : > { %543 = vmatmul.f32.gmra.mxu1 %v183_v37  ;;  %1048 = vmatmul.msk.f32.gmra.mxu3 %vm254_vm1, %v1331_v22 }
  0x88   : > { %647 = vmatmul.f32.gmra.mxu0 %v1337_v24  ;;  %1073 = vmatmul.msk.f32.gmra.mxu2 %vm254_vm1, %v1256_v56 }
  0x8c   : > { %v1451_v11 = vpop.permute.xlu2 %236 }
  0x8e   : > { %546 = vmatmul.f32.gmra.mxu1 %v185_v38  ;;  %1049 = vmatmul.msk.f32.gmra.mxu3 %vm254_vm1, %v1354_v30 }
  0x90   : > { %650 = vmatmul.f32.gmra.mxu0 %v179_v31  ;;  %1074 = vmatmul.msk.f32.gmra.mxu2 %vm254_vm1, %v1284_v3 }
  0x93   : > { %v341_v12 = vpop.f32.mrf.mxu1 }
  0x94   : > { %v1427_v49 = vpop.permute.xlu0 %221 }
  0x96   : > { %659 = vmatmul.f32.vlgmr.msra.gmra.mxu1 %v185_v38  ;;  %1077 = vmatmul.msk.f32.vlgmr.msra.gmra.mxu3 %vm254_vm1, %v1354_v30 }
  0x98   : > { %653 = vmatmul.f32.gmra.mxu0 %v181_v35  ;;  %1075 = vmatmul.msk.f32.gmra.mxu2 %vm254_vm1, %v1310_v15 }
  0x99   : > { %v454_v26 = vpop.f32.mrf.mxu3 }
  0x9a   : > { %v1443_v3 = vpop.permute.xlu1 %231 }
  0x9b   : > { %v344_v39 = vpop.f32.mrf.mxu1 }
  0x9e   : > { %v1468_v34 = vpop.permute.xlu0 %246 }
  0xa0   : > { %656 = vmatmul.f32.gmra.mxu0 %v183_v37  ;;  %1076 = vmatmul.msk.f32.gmra.mxu2 %vm254_vm1, %v1331_v22  ;;  %v1459_v22 = vpop.permute.xlu2 %241 }
  0xa1   : > { %v457_v40 = vpop.f32.mrf.mxu3 }
  0xa3   : > { %v347_v41 = vpop.f32.mrf.mxu1 }
  0xa9   : > { %v460_v43 = vpop.f32.mrf.mxu3 }
  0xab   : > { %v350_v44 = vpop.f32.mrf.mxu1 }
  0xad   : > { %v300_v45 = vpop.f32.mrf.mxu0 }
  0xae   : > { %v301_v46 = vadd.f32 %v300_v45, %v1422_v42 }
  0xb0   : > { %v1425_v47 = vadd.f32 %v341_v12, %v301_v46 }
  0xb1   : > { %v463_v48 = vpop.f32.mrf.mxu3 }
  0xb3   : > { %v353_v50 = vpop.f32.mrf.mxu1  ;;  %v413_v51 = vpop.f32.mrf.mxu2 }
  0xb4   : > { %v414_v52 = vadd.f32 %v413_v51, %v1422_v42 }
  0xb5   : > { %v303_v53 = vpop.f32.mrf.mxu0 }
  0xb6   : > { %v1430_v54 = vadd.f32 %v454_v26, %v414_v52  ;;  %v304_v55 = vadd.f32 %v303_v53, %v1427_v49 }
  0xb8   : > { %v1433_v56 = vadd.f32 %v344_v39, %v304_v55 }
  0xb9   : > { %v466_v58 = vpop.f32.mrf.mxu3 }
  0xbb   : > { %v356_v59 = vpop.f32.mrf.mxu1  ;;  %v416_v60 = vpop.f32.mrf.mxu2 }
  0xbc   : > { %v417_v61 = vadd.f32 %v416_v60, %v1427_v49 }
  0xbd   : > { %v306_v62 = vpop.f32.mrf.mxu0 }
  0xbe   : > { %v1438_v63 = vadd.f32 %v457_v40, %v417_v61  ;;  %v307_v0 = vadd.f32 %v306_v62, %v1435_v57 }
  0xc0   : > { %v1441_v1 = vadd.f32 %v347_v41, %v307_v0 }
  0xc1   : > { %v469_v2 = vpop.f32.mrf.mxu3 }
  0xc3   : > { %v359_v4 = vpop.f32.mrf.mxu1  ;;  %v419_v5 = vpop.f32.mrf.mxu2 }
  0xc4   : > { %v420_v6 = vadd.f32 %v419_v5, %v1435_v57 }
  0xc5   : > { %v309_v7 = vpop.f32.mrf.mxu0 }
  0xc6   : > { %v1446_v8 = vadd.f32 %v460_v43, %v420_v6  ;;  %v310_v9 = vadd.f32 %v309_v7, %v1443_v3 }
  0xc8   : > { %v1449_v10 = vadd.f32 %v350_v44, %v310_v9  ;;  %v1477_v44 = vpop.permute.xlu1 %251 }
  0xc9   : > { %v472_v13 = vpop.f32.mrf.mxu3 }
  0xcb   : > { %v362_v14 = vpop.f32.mrf.mxu1  ;;  %v422_v15 = vpop.f32.mrf.mxu2 }
  0xcc   : > { %v423_v16 = vadd.f32 %v422_v15, %v1443_v3 }
  0xcd   : > { %v312_v17 = vpop.f32.mrf.mxu0 }
  0xce   : > { %v1454_v18 = vadd.f32 %v463_v48, %v423_v16  ;;  %v313_v19 = vadd.f32 %v312_v17, %v1451_v11 }
  0xd0   : > { %v1457_v20 = vadd.f32 %v353_v50, %v313_v19 }
  0xd1   : > { %v475_v21 = vpop.f32.mrf.mxu3 }
  0xd3   : > { %v425_v23 = vpop.f32.mrf.mxu2  ;;  %v526_v24 = vpop.f32.mrf.mxu1 }
  0xd4   : > { %v426_v25 = vadd.f32 %v425_v23, %v1451_v11  ;;  %v527_v29 = vadd.f32 %v526_v24, %v1422_v42 }
  0xd5   : > { %v315_v27 = vpop.f32.mrf.mxu0 }
  0xd6   : > { %v1462_v28 = vadd.f32 %v466_v58, %v426_v25  ;;  %v316_v30 = vadd.f32 %v315_v27, %v1459_v22 }
  0xd8   : > { %v1466_v31 = vadd.f32 %v356_v59, %v316_v30 }
  0xd9   : > { %v567_v32 = vpop.f32.mrf.mxu3 }
  0xda   : > { %v568_v33 = vadd.f32 %v567_v32, %v527_v29 }
  0xdb   : > { %v428_v35 = vpop.f32.mrf.mxu2  ;;  %v529_v36 = vpop.f32.mrf.mxu1 }
  0xdc   : > { %v429_v37 = vadd.f32 %v428_v35, %v1459_v22  ;;  %v530_v38 = vadd.f32 %v529_v36, %v1427_v49  ;;  %v591_v16 = vmax.f32 %v568_v33, 0.0 }
  0xdd   : > { %v318_v12 = vpop.f32.mrf.mxu0 }
  0xde   : > { %v1472_v26 = vadd.f32 %v469_v2, %v429_v37  ;;  %v319_v39 = vadd.f32 %v318_v12, %v1468_v34 }
  0xe0   : > { %v1475_v40 = vadd.f32 %v359_v4, %v319_v39 }
  0xe1   : > { %v570_v41 = vpop.f32.mrf.mxu3 }
  0xe2   : > { %v571_v43 = vadd.f32 %v570_v41, %v530_v38 }
  0xe3   : > { %v431_v45 = vpop.f32.mrf.mxu2  ;;  %v532_v46 = vpop.f32.mrf.mxu1 }
  0xe4   : > { %v432_v48 = vadd.f32 %v431_v45, %v1468_v34  ;;  %v533_v52 = vadd.f32 %v532_v46, %v1435_v57  ;;  %v592_v32 = vmax.f32 %v571_v43, 0.0 }
  0xe5   : > { %v321_v50 = vpop.f32.mrf.mxu0 }
  0xe6   : > { %v1480_v51 = vadd.f32 %v472_v13, %v432_v48  ;;  %v322_v53 = vadd.f32 %v321_v50, %v1477_v44 }
  0xe8   : > { %v1484_v55 = vadd.f32 %v362_v14, %v322_v53 }
  0xe9   : > { %v573_v58 = vpop.f32.mrf.mxu3 }
  0xea   : > { %v574_v59 = vadd.f32 %v573_v58, %v533_v52 }
  0xeb   : > { %v434_v60 = vpop.f32.mrf.mxu2  ;;  %v535_v61 = vpop.f32.mrf.mxu1 }
  0xec   : > { %v435_v62 = vadd.f32 %v434_v60, %v1477_v44  ;;  %v536_v4 = vadd.f32 %v535_v61, %v1443_v3  ;;  %v593_v46 = vmax.f32 %v574_v59, 0.0 }
  0xed   : > { %v639_v0 = vpop.f32.mrf.mxu0 }
  0xee   : > { %v1487_v2 = vadd.f32 %v475_v21, %v435_v62  ;;  %v640_v5 = vadd.f32 %v639_v0, %v1422_v42 }
  0xf1   : > { %v576_v6 = vpop.f32.mrf.mxu3 }
  0xf2   : > { %v577_v7 = vadd.f32 %v576_v6, %v536_v4 }
  0xf3   : > { %v538_v9 = vpop.f32.mrf.mxu1  ;;  %v680_v13 = vpop.f32.mrf.mxu2 }
  0xf4   : > { %v681_v15 = vadd.f32 %v680_v13, %v640_v5  ;;  %v539_v17 = vadd.f32 %v538_v9, %v1451_v11  ;;  %v594_v0 = vmax.f32 %v577_v7, 0.0 }
  0xf5   : > { %v642_v14 = vpop.f32.mrf.mxu0 }
  0xf6   : > { %v704_v19 = vmax.f32 %v681_v15, 0.0  ;;  %v643_v24 = vadd.f32 %v642_v14, %v1427_v49 }
  0xf8   : > { %v1492_v23 = vmax.f32 %v591_v16, %v704_v19  ;;  %808 = vrot.lane.b32.xlu2 %v704_v19, %s1124_s16 }
  0xf9   : > { %v579_v21 = vpop.f32.mrf.mxu3 }
  0xfa   : > { %v580_v25 = vadd.f32 %v579_v21, %v539_v17 }
  0xfb   : > { %v541_v42 = vpop.f32.mrf.mxu1  ;;  %v683_v27 = vpop.f32.mrf.mxu2 }
  0xfc   : > { %v684_v29 = vadd.f32 %v683_v27, %v643_v24  ;;  %v542_v35 = vadd.f32 %v541_v42, %v1459_v22  ;;  %v595_v17 = vmax.f32 %v580_v25, 0.0 }
  0xfd   : > { %v645_v30 = vpop.f32.mrf.mxu0 }
  0xfe   : > { %v705_v33 = vmax.f32 %v684_v29, 0.0  ;;  %v646_v37 = vadd.f32 %v645_v30, %v1435_v57 }
 0x100   : > { %v1497_v36 = vmax.f32 %v592_v32, %v705_v33  ;;  %810 = vrot.lane.b32.xlu0 %v705_v33, %s1124_s16 }
 0x101   : > { %v582_v49 = vpop.f32.mrf.mxu3 }
 0x102   : > { %v583_v38 = vadd.f32 %v582_v49, %v542_v35 }
 0x103   : > { %v544_v12 = vpop.f32.mrf.mxu1  ;;  %v686_v39 = vpop.f32.mrf.mxu2 }
 0x104   : > { %v687_v41 = vadd.f32 %v686_v39, %v646_v37  ;;  %v545_v50 = vadd.f32 %v544_v12, %v1468_v34  ;;  %v596_v35 = vmax.f32 %v583_v38, 0.0  ;;  %v478_v39 = vmax.f32 %v1430_v54, 0.0 }
 0x105   : > { %v648_v45 = vpop.f32.mrf.mxu0 }
 0x106   : > { %v706_v48 = vmax.f32 %v687_v41, 0.0  ;;  %v649_v52 = vadd.f32 %v648_v45, %v1443_v3  ;;  %v480_v41 = vmax.f32 %v1446_v8, 0.0 }
 0x108   : > { %v1502_v43 = vmax.f32 %v593_v46, %v706_v48  ;;  %812 = vrot.lane.b32.xlu1 %v706_v48, %s1124_s16  ;;  %v483_v48 = vmax.f32 %v1472_v26, 0.0 }
 0x109   : > { %v585_v53 = vpop.f32.mrf.mxu3 }
 0x10a   : > { %v586_v57 = vadd.f32 %v585_v53, %v545_v50  ;;  %v479_v50 = vmax.f32 %v1438_v63, 0.0  ;;  %v482_v53 = vmax.f32 %v1462_v28, 0.0  ;;  %v485_v63 = vmax.f32 %v1487_v2, 0.0 }
 0x10b   : > { %v547_v58 = vpop.f32.mrf.mxu1  ;;  %v689_v60 = vpop.f32.mrf.mxu2 }
 0x10c   : > { %v690_v61 = vadd.f32 %v689_v60, %v649_v52  ;;  %v548_v5 = vadd.f32 %v547_v58, %v1477_v44  ;;  %v597_v45 = vmax.f32 %v586_v57, 0.0  ;;  %v484_v52 = vmax.f32 %v1480_v51, 0.0 }
 0x10d   : > { %v651_v62 = vpop.f32.mrf.mxu0  ;;  %v712_v57 = vlaneseq }
 0x10e   : > { %v707_v4 = vmax.f32 %v690_v61, 0.0  ;;  %v652_v6 = vadd.f32 %v651_v62, %v1451_v11 }
 0x10f   : > { %v713_v58 = vand.u32 127, %v712_v57 }
 0x110   : > { %v1507_v59 = vmax.f32 %v594_v0, %v707_v4  ;;  %814 = vrot.lane.b32.xlu2 %v707_v4, %s1124_s16 }
 0x111   : > { %v588_v9 = vpop.f32.mrf.mxu3  ;;  %v718_v60 = vand.u32 3, %v713_v58 }
 0x112   : > { %v589_v3 = vadd.f32 %v588_v9, %v548_v5 }
 0x113   : > { %v692_v13 = vpop.f32.mrf.mxu2  ;;  %v660_v14 = vpop.f32.mrf.mxu1  ;;  %vm1552_vm3 = vcmp.eq.s32.totalorder %v718_v60, 0 }
 0x114   : > { %v693_v15 = vadd.f32 %v692_v13, %v652_v6  ;;  %v661_v24 = vadd.f32 %v660_v14, %v1477_v44  ;;  %v598_v29 = vmax.f32 %v589_v3, 0.0 }
 0x115   : > { %v654_v16 = vpop.f32.mrf.mxu0 }
 0x116   : > { %v708_v19 = vmax.f32 %v693_v15, 0.0  ;;  %v655_v42 = vadd.f32 %v654_v16, %v1459_v22 }
 0x118   : > { %v1512_v7 = vmax.f32 %v595_v17, %v708_v19  ;;  %816 = vrot.lane.b32.xlu0 %v708_v19, %s1124_s16 }
 0x119   : > { %v701_v21 = vpop.f32.mrf.mxu3 }
 0x11a   : > { %v702_v11 = vadd.f32 %v701_v21, %v661_v24 }
 0x11b   : > { %v695_v27 = vpop.f32.mrf.mxu2 }
 0x11c   : > { %v711_v30 = vmax.f32 %v702_v11, 0.0  ;;  %v696_v32 = vadd.f32 %v695_v27, %v655_v42  ;;  %v366_v11 = vmax.f32 %v1433_v56, 0.0 }
 0x11d   : > { %v657_v25 = vpop.f32.mrf.mxu0 }
 0x11e   : > { %v1516_v33 = vmax.f32 %v598_v29, %v711_v30  ;;  %v709_v37 = vmax.f32 %v696_v32, 0.0  ;;  %v658_v44 = vadd.f32 %v657_v25, %v1468_v34  ;;  %v481_v34 = vmax.f32 %v1454_v18, 0.0 }
 0x11f   : > { %v728_v32 = vmax.f32 %v366_v11, %v479_v50 }
 0x120   : > { %v1518_v49 = vmax.f32 %v596_v35, %v709_v37  ;;  %818 = vrot.lane.b32.xlu1 %v709_v37, %s1124_s16  ;;  %822 = vrot.lane.b32.xlu0 %v711_v30, %s1124_s16 }
 0x123   : > { %v698_v12 = vpop.f32.mrf.mxu2 }
 0x124   : > { %v699_v22 = vadd.f32 %v698_v12, %v658_v44  ;;  %v369_v12 = vmax.f32 %v1457_v20, 0.0 }
 0x126   : > { %v710_v38 = vmax.f32 %v699_v22, 0.0  ;;  %v731_v58 = vmax.f32 %v369_v12, %v482_v53 }
 0x128   : > { %v798_v46 = vmax.f32 %v597_v45, %v710_v38  ;;  %743 = vrot.lane.b32.xlu1 %v478_v39, %s1124_s16  ;;  %747 = vrot.lane.b32.xlu0 %v480_v41, %s1124_s16 }
 0x129   : > { %820 = vrot.lane.b32.xlu2 %v710_v38, %s1124_s16 }
 0x130   : > { %749 = vrot.lane.b32.xlu1 %v481_v34, %s1124_s16  ;;  %753 = vrot.lane.b32.xlu0 %v483_v48, %s1124_s16 }
 0x131   : > { %745 = vrot.lane.b32.xlu2 %v479_v50, %s1124_s16 }
 0x138   : > { %755 = vrot.lane.b32.xlu1 %v484_v52, %s1124_s16 }
 0x139   : > { %751 = vrot.lane.b32.xlu2 %v482_v53, %s1124_s16 }
 0x141   : > { %757 = vrot.lane.b32.xlu2 %v485_v63, %s1124_s16 }
 0x152   : > { %v809_v28 = vpop.permute.xlu2 %808 }
 0x153   : > { %v832_v62 = vsel %vm767_vm2, 0.0, %v809_v28 }
 0x154   : > { %v840_v0 = vsel %vm1552_vm3, 0.0, %v832_v62 }
 0x155   : > { %v1560_v4 = vmax.f32 %v1492_v23, %v840_v0 }
 0x157   : > { %872 = vrot.lane.b32.xlu0 %v1560_v4, %s1125_s18 }
 0x16a   : > { %v815_v5 = vpop.permute.xlu2 %814 }
 0x16b   : > { %v835_v6 = vsel %vm767_vm2, 0.0, %v815_v5  ;;  %v372_v5 = vmax.f32 %v1484_v55, 0.0 }
 0x16c   : > { %v843_v9 = vsel %vm1552_vm3, 0.0, %v835_v6 }
 0x16d   : > { %v1568_v3 = vmax.f32 %v1507_v59, %v843_v9 }
 0x16f   : > { %878 = vrot.lane.b32.xlu0 %v1568_v3, %s1125_s18 }
 0x172   : > { %v811_v13 = vpop.permute.xlu0 %810 }
 0x173   : > { %v833_v23 = vsel %vm767_vm2, 0.0, %v811_v13 }
 0x174   : > { %v841_v15 = vsel %vm1552_vm3, 0.0, %v833_v23 }
 0x175   : > { %v1576_v14 = vmax.f32 %v1497_v36, %v841_v15 }
 0x177   : > { %874 = vrot.lane.b32.xlu1 %v1576_v14, %s1125_s18 }
 0x17a   : > { %v813_v16 = vpop.permute.xlu1 %812 }
 0x17b   : > { %v834_v17 = vsel %vm767_vm2, 0.0, %v813_v16  ;;  %v734_v16 = vmax.f32 %v372_v5, %v485_v63 }
 0x17c   : > { %v842_v59 = vsel %vm1552_vm3, 0.0, %v834_v17 }
 0x17d   : > { %v1584_v19 = vmax.f32 %v1502_v43, %v842_v59 }
 0x17f   : > { %876 = vrot.lane.b32.xlu2 %v1584_v19, %s1125_s18 }
 0x183   : > { %v821_v24 = vpop.permute.xlu2 %820 }
 0x184   : > { %v838_v21 = vsel %vm767_vm2, 0.0, %v821_v24  ;;  %v368_v24 = vmax.f32 %v1449_v10, 0.0 }
 0x185   : > { %v846_v36 = vsel %vm1552_vm3, 0.0, %v838_v21  ;;  %v370_v21 = vmax.f32 %v1466_v31, 0.0 }
 0x186   : > { %v1591_v42 = vmax.f32 %v798_v46, %v846_v36  ;;  %v730_v63 = vmax.f32 %v368_v24, %v481_v34  ;;  %v371_v34 = vmax.f32 %v1475_v40, 0.0 }
 0x188   : > { %884 = vrot.lane.b32.xlu0 %v1591_v42, %s1125_s18  ;;  %v733_v26 = vmax.f32 %v371_v34, %v484_v52 }
 0x18a   : > { %v817_v27 = vpop.permute.xlu0 %816 }
 0x18b   : > { %v836_v43 = vsel %vm767_vm2, 0.0, %v817_v27  ;;  %v746_v29 = vpop.permute.xlu2 %745  ;;  %v732_v27 = vmax.f32 %v370_v21, %v483_v48 }
 0x18c   : > { %v844_v30 = vsel %vm1552_vm3, 0.0, %v836_v43  ;;  %v769_v35 = vsel %vm767_vm2, 0.0, %v746_v29 }
 0x18d   : > { %v1601_v37 = vmax.f32 %v1512_v7, %v844_v30  ;;  %v777_v25 = vsel %vm1552_vm3, 0.0, %v769_v35 }
 0x18e   : > { %v1605_v44 = vmax.f32 %v728_v32, %v777_v25 }
 0x18f   : > { %880 = vrot.lane.b32.xlu1 %v1601_v37, %s1125_s18 }
 0x190   : > { %v857_v56 = vmax.f32 %v1605_v44, %v1576_v14 }
 0x192   : > { %v819_v22 = vpop.permute.xlu1 %818  ;;  %v823_v45 = vpop.permute.xlu0 %822 }
 0x193   : > { %v837_v38 = vsel %vm767_vm2, 0.0, %v819_v22  ;;  %v839_v7 = vsel %vm767_vm2, 0.0, %v823_v45  ;;  %v752_v46 = vpop.permute.xlu2 %751 }
 0x194   : > { %v845_v50 = vsel %vm1552_vm3, 0.0, %v837_v38  ;;  %v847_v57 = vsel %vm1552_vm3, 0.0, %v839_v7  ;;  %v772_v60 = vsel %vm767_vm2, 0.0, %v752_v46 }
 0x195   : > { %v1620_v28 = vmax.f32 %v1518_v49, %v845_v50  ;;  %v1623_v20 = vmax.f32 %v1516_v33, %v847_v57  ;;  %v780_v62 = vsel %vm1552_vm3, 0.0, %v772_v60  ;;  %v367_v49 = vmax.f32 %v1441_v1, 0.0 }
 0x196   : > { %v1627_v0 = vmax.f32 %v731_v58, %v780_v62 }
 0x197   : > { %886 = vrot.lane.b32.xlu1 %v1623_v20, %s1125_s18  ;;  %882 = vrot.lane.b32.xlu2 %v1620_v28, %s1125_s18  ;;  %v729_v9 = vmax.f32 %v367_v49, %v480_v41 }
 0x198   : > { %v860_v53 = vmax.f32 %v1627_v0, %v1601_v37 }
 0x19a   : > { %v744_v33 = vpop.permute.xlu1 %743  ;;  %v748_v6 = vpop.permute.xlu0 %747 }
 0x19b   : > { %v770_v13 = vsel %vm767_vm2, 0.0, %v748_v6  ;;  %v758_v23 = vpop.permute.xlu2 %757  ;;  %v768_v22 = vsel %vm767_vm2, 0.0, %v744_v33 }
 0x19c   : > { %v778_v15 = vsel %vm1552_vm3, 0.0, %v770_v13  ;;  %v775_v17 = vsel %vm767_vm2, 0.0, %v758_v23  ;;  %v776_v45 = vsel %vm1552_vm3, 0.0, %v768_v22 }
 0x19d   : > { %v786_v59 = vmax.f32 %v729_v9, %v778_v15  ;;  %v783_v1 = vsel %vm1552_vm3, 0.0, %v775_v17 }
 0x19e   : > { %v1647_v55 = vmax.f32 %v734_v16, %v783_v1 }
 0x19f   : > { %v858_v8 = vmax.f32 %v786_v59, %v1584_v19 }
 0x1a0   : > { %v863_v41 = vmax.f32 %v1647_v55, %v1623_v20 }
 0x1a2   : > { %v750_v36 = vpop.permute.xlu1 %749  ;;  %v754_v2 = vpop.permute.xlu0 %753 }
 0x1a3   : > { %v771_v11 = vsel %vm767_vm2, 0.0, %v750_v36  ;;  %v773_v43 = vsel %vm767_vm2, 0.0, %v754_v2 }
 0x1a4   : > { %v779_v19 = vsel %vm1552_vm3, 0.0, %v771_v11  ;;  %v781_v10 = vsel %vm1552_vm3, 0.0, %v773_v43 }
 0x1a5   : > { %v787_v29 = vmax.f32 %v730_v63, %v779_v19  ;;  %v789_v31 = vmax.f32 %v732_v27, %v781_v10 }
 0x1a7   : > { %v859_v30 = vmax.f32 %v787_v29, %v1568_v3  ;;  %v861_v18 = vmax.f32 %v789_v31, %v1620_v28  ;;  %v365_v3 = vmax.f32 %v1425_v47, 0.0 }
 0x1a9   : > { %v727_v40 = vmax.f32 %v365_v3, %v478_v39 }
 0x1aa   : > { %v756_v32 = vpop.permute.xlu1 %755 }
 0x1ab   : > { %v774_v48 = vsel %vm767_vm2, 0.0, %v756_v32  ;;  %v784_v51 = vmax.f32 %v727_v40, %v776_v45 }
 0x1ac   : > { %v782_v35 = vsel %vm1552_vm3, 0.0, %v774_v48 }
 0x1ad   : > { %v790_v25 = vmax.f32 %v733_v26, %v782_v35  ;;  %v856_v38 = vmax.f32 %v784_v51, %v1560_v4 }
 0x1af   : > { %v862_v12 = vmax.f32 %v790_v25, %v1591_v42 }
 0x1c9   : > { %v873_v52 = vpop.permute.xlu0 %872 }
 0x1ca   : > { %v897_v47 = vsel %vm896_vm4, 0.0, %v873_v52 }
 0x1cb   : > { %v905_v54 = vmax.f32 %v856_v38, %v897_v47 }
 0x1cd   : > { %914 = vst.msk [vmem:[%s1684_s22] sm:$0xff] %vm913_vm5, %v905_v54 }
 0x1d9   : > { %v877_v39 = vpop.permute.xlu2 %876 }
 0x1da   : > { %v899_v61 = vsel %vm896_vm4, 0.0, %v877_v39 }
 0x1db   : > { %v907_v4 = vmax.f32 %v858_v8, %v899_v61 }
 0x1dd   : > { %916 = vst.msk [vmem:[%s1684_s22 + $0x10] sm:$0xff] %vm913_vm5, %v907_v4 }
 0x1e1   : > { %v879_v42 = vpop.permute.xlu0 %878 }
 0x1e2   : > { %v900_v7 = vsel %vm896_vm4, 0.0, %v879_v42 }
 0x1e3   : > { %v908_v46 = vmax.f32 %v859_v30, %v900_v7 }
 0x1e5   : > { %917 = vst.msk [vmem:[%s1684_s22 + $0x18] sm:$0xff] %vm913_vm5, %v908_v46 }
 0x1e9   : > { %v875_v50 = vpop.permute.xlu1 %874 }
 0x1ea   : > { %v898_v57 = vsel %vm896_vm4, 0.0, %v875_v50 }
 0x1eb   : > { %v906_v58 = vmax.f32 %v857_v56, %v898_v57 }
 0x1ed   : > { %915 = vst.msk [vmem:[%s1684_s22 + $0x8] sm:$0xff] %vm913_vm5, %v906_v58 }
 0x1f1   : > { %v883_v60 = vpop.permute.xlu2 %882 }
 0x1f2   : > { %v902_v28 = vsel %vm896_vm4, 0.0, %v883_v60 }
 0x1f3   : > { %v910_v20 = vmax.f32 %v861_v18, %v902_v28 }
 0x1f5   : > { %919 = vst.msk [vmem:[%s1684_s22 + $0x28] sm:$0xff] %vm913_vm5, %v910_v20 }
 0x1fa   : > { %v885_v62 = vpop.permute.xlu0 %884 }
 0x1fb   : > { %v903_v49 = vsel %vm896_vm4, 0.0, %v885_v62 }
 0x1fc   : > { %v911_v5 = vmax.f32 %v862_v12, %v903_v49 }
 0x1fe   : > { %920 = vst.msk [vmem:[%s1684_s22 + $0x30] sm:$0xff] %vm913_vm5, %v911_v5 }
 0x201   : > { %v881_v33 = vpop.permute.xlu1 %880 }
 0x202   : > { %v901_v6 = vsel %vm896_vm4, 0.0, %v881_v33 }
 0x203   : > { %v909_v14 = vmax.f32 %v860_v53, %v901_v6 }
 0x205   : > { %918 = vst.msk [vmem:[%s1684_s22 + $0x20] sm:$0xff] %vm913_vm5, %v909_v14 }
 0x209   : > { %v887_v44 = vpop.permute.xlu1 %886 }
 0x20a   : > { %v904_v56 = vsel %vm896_vm4, 0.0, %v887_v44 }
 0x20b   : > { %v912_v9 = vmax.f32 %v863_v41, %v904_v56 }
 0x20d   : > { %921 = vst.msk [vmem:[%s1684_s22 + $0x38] sm:$0xff] %vm913_vm5, %v912_v9 }
 0x20e PF: > { %s13_s12 = sadd.s32 1, %s1121_s12  }
 0x20f   : > { %p10_p4 = scmp.ge.s32.totalorder %s13_s12, 4  }
 0x211   :  { %12 = sbr.rel (!%p10_p4) target bundleno = 1 (0x1), region = 65 }

</bundles_post_ra>
